<compile_context>
chip_gen: v6e
topology: v6e:2x2x1
jax: 0.10.0
libtpu: 0.0.40
codegen_flags: <defaults>
</compile_context>

<pallas_src>
import jax
import jax.numpy as jnp
from jax.experimental import pallas as pl
from jax.experimental.pallas import tpu as pltpu


def _round_up(x, m):
    return ((x + m - 1) // m) * m


def mlp_kernel(x_ref, w1_ref, b1_ref, w2_ref, b2_ref, o_ref):
    # Linear 1 (MXU, f32 accumulation) + bias + ReLU (f32 epilogue).
    h = jnp.dot(x_ref[...], w1_ref[...], preferred_element_type=jnp.float32)
    h = jnp.maximum(h + b1_ref[...], 0.0)                       # (TB, H) f32
    # Linear 2 (MXU, f32 accumulation) + bias.
    y = jnp.dot(h.astype(w2_ref.dtype), w2_ref[...],
                preferred_element_type=jnp.float32)
    y = y + b2_ref[...]                                         # (TB, O) f32
    # Sigmoid as a single EUP transcendental (robust for large |y|).
    o_ref[...] = (0.5 * jnp.tanh(0.5 * y) + 0.5).astype(o_ref.dtype)


def prepare_params(w1, b1, w2, b2, compute_dtype=jnp.bfloat16):
    """One-time layout/cast of parameters (done outside the forward call).

    Weights go to the MXU-operand dtype; biases stay f32 and are reshaped to
    (1, N) so they broadcast over the batch tile inside the kernel.
    """
    return (w1.astype(compute_dtype),
            b1.reshape(1, -1).astype(jnp.float32),
            w2.astype(compute_dtype),
            b2.reshape(1, -1).astype(jnp.float32))


def my_model_forward(x, w1, b1, w2, b2, *, block_batch=512):
    """Forward of Linear -> ReLU -> Linear -> Sigmoid.

    x : (B, In)   (any float dtype; cast to w1.dtype for the MXU)
    w1: (In, H)   (pre-transposed vs. torch's (H, In) so y = x @ W + b)
    b1: (H,) or (1, H) float32
    w2: (H, O)
    b2: (O,) or (1, O) float32
    Returns (B, O) float32.
    """
    B, In = x.shape
    In_w, H = w1.shape
    H_w, O = w2.shape
    assert In_w == In and H_w == H

    compute_dtype = w1.dtype
    x = x.astype(compute_dtype)
    b1 = b1.reshape(1, H).astype(jnp.float32)
    b2 = b2.reshape(1, O).astype(jnp.float32)

    # Balanced batch tiles: ~equal rows per grid step, rounded to the sublane
    # packing of the operand dtype (16 rows for bf16, 8 for f32).  The ragged
    # last tile is handled by Pallas partial-block masking (no host padding).
    sub = 16 if compute_dtype.itemsize == 2 else 8
    n_tiles = pl.cdiv(B, block_batch)
    TB = _round_up(pl.cdiv(B, n_tiles), sub)
    n_tiles = pl.cdiv(B, TB)

    # Explicit VMEM budget: resident weights/biases + double-buffered x / out
    # tiles, with generous headroom (capped below v7x's 32 MiB scoped default).
    itemsize = compute_dtype.itemsize
    resident = (w1.size + w2.size) * itemsize + (b1.size + b2.size) * 4
    per_step = 2 * TB * In * itemsize + 2 * TB * O * 4
    vmem_limit = int(min(32 << 20, max(16 << 20, 4 * (resident + per_step))))

    # Weights & biases: whole arrays pinned in VMEM, reused every grid step.
    vmem_resident = pl.BlockSpec(memory_space=pltpu.MemorySpace.VMEM)

    out = pl.pallas_call(
        mlp_kernel,
        out_shape=jax.ShapeDtypeStruct((B, O), jnp.float32),
        grid=(n_tiles,),
        in_specs=[
            pl.BlockSpec((TB, In), lambda i: (i, 0)),   # x: streamed per tile
            vmem_resident,                              # w1
            vmem_resident,                              # b1
            vmem_resident,                              # w2
            vmem_resident,                              # b2
        ],
        out_specs=pl.BlockSpec((TB, O), lambda i: (i, 0)),
        compiler_params=pltpu.CompilerParams(
            dimension_semantics=("parallel",),          # megacore sharding
            vmem_limit_bytes=vmem_limit,
        ),
    )(x, w1, b1, w2, b2)

    return out


def init_params(key, input_size, hidden_size, output_size):
    k1, k2, k3, k4 = jax.random.split(key, 4)
    # Deterministic synthetic init (roughly matches nn.Linear's uniform scaling).
    lim1 = 1.0 / jnp.sqrt(input_size)
    lim2 = 1.0 / jnp.sqrt(hidden_size)
    w1 = jax.random.uniform(k1, (input_size, hidden_size), jnp.float32, -lim1, lim1)
    b1 = jax.random.uniform(k2, (hidden_size,), jnp.float32, -lim1, lim1)
    w2 = jax.random.uniform(k3, (hidden_size, output_size), jnp.float32, -lim2, lim2)
    b2 = jax.random.uniform(k4, (output_size,), jnp.float32, -lim2, lim2)
    return w1, b1, w2, b2


def reference(x, w1, b1, w2, b2):
    h = jnp.maximum(x @ w1 + b1.reshape(1, -1), 0.0)
    return jax.nn.sigmoid(h @ w2 + b2.reshape(1, -1))


if __name__ == "__main__":
    input_size, hidden_size, output_size = 32, 64, 16

    key = jax.random.PRNGKey(0)
    kx, kp, kx2 = jax.random.split(key, 3)
    w1, b1, w2, b2 = init_params(kp, input_size, hidden_size, output_size)

    # bf16 MXU operands (default recommendation for v6e/v7x), prepared once.
    w1b, b1b, w2b, b2b = prepare_params(w1, b1, w2, b2, jnp.bfloat16)

    # Small-batch check (single grid step).
    x = jax.random.normal(kx, (8, input_size), dtype=jnp.float32)
    out = my_model_forward(x, w1b, b1b, w2b, b2b)
    jax.block_until_ready(out)
    ref = reference(x, w1, b1, w2, b2)
    assert out.shape == (8, output_size)
    assert jnp.allclose(out, ref, atol=3e-2, rtol=3e-2)

    # Ragged, multi-tile batch: balanced tiles, no host-side padding or slicing.
    x2 = jax.random.normal(kx2, (300, input_size), dtype=jnp.float32)
    out2 = my_model_forward(x2, w1b, b1b, w2b, b2b, block_batch=128)
    jax.block_until_ready(out2)
    ref2 = reference(x2, w1, b1, w2, b2)
    assert out2.shape == (300, output_size)
    assert jnp.allclose(out2, ref2, atol=3e-2, rtol=3e-2)

    # f32 operand path (v5e-friendly), tighter tolerance.
    w1f, b1f, w2f, b2f = prepare_params(w1, b1, w2, b2, jnp.float32)
    out3 = my_model_forward(x2, w1f, b1f, w2f, b2f)
    jax.block_until_ready(out3)
    assert jnp.allclose(out3, ref2, atol=1e-2, rtol=1e-2)

    print("KERNEL_OK")
</pallas_src>

<mosaic_0001>
module attributes {stable_mosaic.version = 11 : i64} {
  func.func @mlp_kernel(%arg0: i32, %arg1: memref<16x32xbf16, #tpu.memory_space<vmem>>, %arg2: memref<32x64xbf16, #tpu.memory_space<vmem>>, %arg3: memref<1x64xf32, #tpu.memory_space<vmem>>, %arg4: memref<64x16xbf16, #tpu.memory_space<vmem>>, %arg5: memref<1x16xf32, #tpu.memory_space<vmem>>, %arg6: memref<16x16xf32, #tpu.memory_space<vmem>>) attributes {dimension_semantics = [#tpu.dimension_semantics<parallel>], iteration_bounds = array<i64: 1>, scalar_prefetch = 0 : i64, scratch_operands = 0 : i64, tpu.core_type = #tpu.core_type<tc>, window_params = [{transform_indices = @transform_0, window_bounds = array<i64: 16, 32>}, {pipeline_mode = #tpu.pipeline_mode<synchronous>, transform_indices = @transform_1, window_bounds = array<i64: 32, 64>}, {pipeline_mode = #tpu.pipeline_mode<synchronous>, transform_indices = @transform_2, window_bounds = array<i64: 1, 64>}, {pipeline_mode = #tpu.pipeline_mode<synchronous>, transform_indices = @transform_3, window_bounds = array<i64: 64, 16>}, {pipeline_mode = #tpu.pipeline_mode<synchronous>, transform_indices = @transform_4, window_bounds = array<i64: 1, 16>}, {transform_indices = @transform_5, window_bounds = array<i64: 16, 16>}]} {
    %c0 = arith.constant 0 : index
    %c0_0 = arith.constant 0 : index
    %0 = vector.load %arg1[%c0, %c0_0] : memref<16x32xbf16, #tpu.memory_space<vmem>>, vector<16x32xbf16>
    %c0_1 = arith.constant 0 : index
    %c0_2 = arith.constant 0 : index
    %1 = vector.load %arg2[%c0_1, %c0_2] : memref<32x64xbf16, #tpu.memory_space<vmem>>, vector<32x64xbf16>
    %cst = arith.constant dense<0.000000e+00> : vector<16x64xf32>
    %2 = tpu.matmul %0, %1, %cst {dimension_numbers = #tpu.dot_dimension_numbers<[1], [0], [0], [1], [0, 0, 1, 1], [], []>} : vector<16x32xbf16>, vector<32x64xbf16>, vector<16x64xf32> -> vector<16x64xf32>
    %c0_3 = arith.constant 0 : index
    %c0_4 = arith.constant 0 : index
    %3 = vector.load %arg3[%c0_3, %c0_4] : memref<1x64xf32, #tpu.memory_space<vmem>>, vector<1x64xf32>
    %4 = vector.broadcast %3 : vector<1x64xf32> to vector<16x64xf32>
    %5 = arith.addf %2, %4 : vector<16x64xf32>
    %cst_5 = arith.constant 0.000000e+00 : f32
    %6 = vector.broadcast %cst_5 : f32 to vector<16x64xf32>
    %7 = arith.maximumf %5, %6 : vector<16x64xf32>
    %8 = arith.truncf %7 : vector<16x64xf32> to vector<16x64xbf16>
    %c0_6 = arith.constant 0 : index
    %c0_7 = arith.constant 0 : index
    %9 = vector.load %arg4[%c0_6, %c0_7] : memref<64x16xbf16, #tpu.memory_space<vmem>>, vector<64x16xbf16>
    %cst_8 = arith.constant dense<0.000000e+00> : vector<16x16xf32>
    %10 = tpu.matmul %8, %9, %cst_8 {dimension_numbers = #tpu.dot_dimension_numbers<[1], [0], [0], [1], [0, 0, 1, 1], [], []>} : vector<16x64xbf16>, vector<64x16xbf16>, vector<16x16xf32> -> vector<16x16xf32>
    %c0_9 = arith.constant 0 : index
    %c0_10 = arith.constant 0 : index
    %11 = vector.load %arg5[%c0_9, %c0_10] : memref<1x16xf32, #tpu.memory_space<vmem>>, vector<1x16xf32>
    %12 = vector.broadcast %11 : vector<1x16xf32> to vector<16x16xf32>
    %13 = arith.addf %10, %12 : vector<16x16xf32>
    %cst_11 = arith.constant 5.000000e-01 : f32
    %14 = vector.broadcast %cst_11 : f32 to vector<16x16xf32>
    %15 = arith.mulf %14, %13 : vector<16x16xf32>
    %16 = math.tanh %15 : vector<16x16xf32>
    %cst_12 = arith.constant 5.000000e-01 : f32
    %17 = vector.broadcast %cst_12 : f32 to vector<16x16xf32>
    %18 = arith.mulf %17, %16 : vector<16x16xf32>
    %cst_13 = arith.constant 5.000000e-01 : f32
    %19 = vector.broadcast %cst_13 : f32 to vector<16x16xf32>
    %20 = arith.addf %18, %19 : vector<16x16xf32>
    %c0_14 = arith.constant 0 : index
    %c0_15 = arith.constant 0 : index
    %21 = vector.load %arg6[%c0_14, %c0_15] : memref<16x16xf32, #tpu.memory_space<vmem>>, vector<16x16xf32>
    tpu.vector_store %arg6[%c0_14, %c0_15], %20 {strides = array<i32>} : memref<16x16xf32, #tpu.memory_space<vmem>>, vector<16x16xf32>,
    return
  }
  func.func @transform_0(%arg0: i32) -> (i32, i32) {
    %c0_i32 = arith.constant 0 : i32
    %c0_i32_0 = arith.constant 0 : i32
    return %arg0, %c0_i32 : i32, i32
  }
  func.func @transform_1(%arg0: i32) -> (i32, i32) {
    %c0_i32 = arith.constant 0 : i32
    %c0_i32_0 = arith.constant 0 : i32
    %c0_i32_1 = arith.constant 0 : i32
    return %c0_i32, %c0_i32_0 : i32, i32
  }
  func.func @transform_2(%arg0: i32) -> (i32, i32) {
    %c0_i32 = arith.constant 0 : i32
    %c0_i32_0 = arith.constant 0 : i32
    %c0_i32_1 = arith.constant 0 : i32
    return %c0_i32, %c0_i32_0 : i32, i32
  }
  func.func @transform_3(%arg0: i32) -> (i32, i32) {
    %c0_i32 = arith.constant 0 : i32
    %c0_i32_0 = arith.constant 0 : i32
    %c0_i32_1 = arith.constant 0 : i32
    return %c0_i32, %c0_i32_0 : i32, i32
  }
  func.func @transform_4(%arg0: i32) -> (i32, i32) {
    %c0_i32 = arith.constant 0 : i32
    %c0_i32_0 = arith.constant 0 : i32
    %c0_i32_1 = arith.constant 0 : i32
    return %c0_i32, %c0_i32_0 : i32, i32
  }
  func.func @transform_5(%arg0: i32) -> (i32, i32) {
    %c0_i32 = arith.constant 0 : i32
    %c0_i32_0 = arith.constant 0 : i32
    return %arg0, %c0_i32 : i32, i32
  }
}

</mosaic_0001>

<bundles_post_ra>
// kernel: tpu_custom_call.1
= control target key start
LH: loop header
LB: loop body
LE: loop exit
PB: predicated region body
PF: predicated region fallthrough
CT: control target
= control target key end

     0   :  { %10 = vsyncpa [#allocation3], 0  ;;  %v288_v1 = vmov 0.0   ;;  %vm289_vm0 = vmmov 0   ;;  %vm52_vm1 = vcmask 261120   ;;  %vm139_vm2 = vcmask 523264   ;;  %s353_s0 = inlined_call_operand.vmem [shape: bf16[8,32], index: 0, kind: input, shape index: {}]   ;;  %s354_s1 = inlined_call_operand.vmem [shape: bf16[32,64], index: 1, kind: input, shape index: {}]   ;;  %s355_s2 = inlined_call_operand.vmem [shape: f32[1,64], index: 2, kind: input, shape index: {}]   ;;  %s356_s3 = inlined_call_operand.vmem [shape: bf16[64,16], index: 3, kind: input, shape index: {}]   ;;  %s357_s4 = inlined_call_operand.vmem [shape: f32[1,16], index: 4, kind: input, shape index: {}]   ;;  %s358_s5 = inlined_call_operand.hbm [shape: f32[8,16], index: 5, kind: output, shape index: {}]  }
   0x1   :  { %v255_v0 = vld [vmem:[%s354_s1 + $0x8] sm:$0xff]   ;;  %230 = vmatprep.subr.bf16.mxu0 %v288_v1  ;;  %238 = vmatprep.subr.bf16.mxu1 %v288_v1  ;;  %v256_v2 = vld [vmem:[%s354_s1] sm:$0xff]   ;;  %v258_v4 = vld [vmem:[%s356_s3 + $0x18] sm:$0xff]   ;;  %vm192_vm3 = vcmask 130048  }
   0x2   :  { %231 = vmatpush3.bf16.msra.mxu0 %v255_v0  ;;  %234 = vmatprep.mubr.msk.bf16.mxu0 %vm289_vm0, %v288_v1  ;;  %v257_v3 = vld [vmem:[%s353_s0] sm:$0xff]   ;;  %v259_v5 = vld [vmem:[%s356_s3 + $0x10] sm:$0xff]   ;;  %v260_v6 = vld [vmem:[%s356_s3 + $0x8] sm:$0xff]  }
   0x3   :  { %232 = vmatprep.subr.bf16.mxu0 %v288_v1  ;;  %246 = vmatprep.mubr.msk.bf16.mxu1 %vm289_vm0, %v288_v1  ;;  %v261_v7 = vld [vmem:[%s356_s3] sm:$0xff]  }
   0x4   :  { %239 = vmatpush3.bf16.msra.mxu1 %v258_v4  ;;  %v211_v8 = vld [vmem:[%s355_s2] ss:$0 sm:$0xff] }
   0x5   :  { %240 = vmatprep.subr.bf16.mxu1 %v288_v1  ;;  %v216_v18 = vld [vmem:[%s357_s4] ss:$0 sm:$0xff] }
   0x6   :  { %233 = vmatpush3.bf16.msra.mxu0 %v256_v2 }
   0x8   :  { %241 = vmatpush3.bf16.msra.mxu1 %v259_v5 }
   0x9   :  { %235 = vmatmul.mubr.msk.bf16.vlgmr.msra.gmra.mxu0 %vm52_vm1, %v257_v3  ;;  %242 = vmatprep.subr.bf16.mxu1 %v288_v1 }
   0xc   :  { %243 = vmatpush3.bf16.msra.mxu1 %v260_v6 }
   0xd   :  { %244 = vmatprep.subr.bf16.mxu1 %v288_v1 }
  0x10   :  { %245 = vmatpush3.bf16.msra.mxu1 %v261_v7 }
  0xc9   :  { %v90_v9 = vpop.f32.mrf.mxu0 }
  0xca   :  { %v91_v11 = vadd.f32 %v211_v8, %v90_v9 }
  0xcb   :  { %v236_v10 = vpop.f32.mrf.mxu0 }
  0xcc   :  { %v97_v15 = vmax.f32 %v91_v11, 0.0 }
  0xcd   :  { %v93_v12 = vpop.f32.mrf.mxu0 }
  0xce   :  { %v94_v13 = vadd.f32 %v211_v8, %v93_v12 }
  0xcf   :  { %v237_v14 = vpop.f32.mrf.mxu0 }
  0xd0   :  { %v98_v16 = vmax.f32 %v94_v13, 0.0 }
  0xd2   :  { %v99_v17 = vpack.c.bf16 %v98_v16, %v97_v15 }
  0xd4   :  { %247 = vmatmul.mubr.msk.bf16.vlgmr.msra.gmra.mxu1 %vm139_vm2, %v99_v17 }
 0x194   :  { %v177_v19 = vpop.f32.mrf.mxu1 }
 0x195   :  { %v178_v20 = vadd.f32 %v216_v18, %v177_v19 }
 0x196   :  { %v248_v21 = vpop.f32.mrf.mxu1 }
 0x197   :  { %v184_v22 = vmul.f32 0.5, %v178_v20 }
 0x198   :  { %v180_v23 = vpop.f32.mrf.mxu1 }
 0x199   :  { %262 = vtanh.f32 %v184_v22  ;;  %v181_v24 = vadd.f32 %v216_v18, %v180_v23 }
 0x19a   :  { %v249_v25 = vpop.f32.mrf.mxu1 }
 0x19b   :  { %v185_v26 = vmul.f32 0.5, %v181_v24 }
 0x19d   :  { %264 = vtanh.f32 %v185_v26 }
 0x1a6   :  { %v263_v27 = vpop.eup %262 }
 0x1a7   :  { %v188_v28 = vmul.f32 0.5, %v263_v27 }
 0x1a9   :  { %v190_v29 = vadd.f32 0.5, %v188_v28 }
 0x1aa   :  { %v265_v30 = vpop.eup %264 }
 0x1ab   :  { %193 = vst.msk [vmem:[#allocation2] sm:$0xff] %vm192_vm3, %v190_v29  ;;  %v189_v31 = vmul.f32 0.5, %v265_v30 }
 0x1ad   :  { %v191_v32 = vadd.f32 0.5, %v189_v31 }
 0x1af   :  { %194 = vst.msk [vmem:[#allocation2 + $0x8] sm:$0xff] %vm192_vm3, %v191_v32 }
 0x1b0   :  { %199 = vsyncadd [#allocation3], 128  ;;  %s290_s2 = smov [#allocation2]  }
 0x1b1   :  { %s200_s3 = sshll.u32 %s290_s2, 4  ;;  %s201_s3 = int_to_ptr.vmem [resolvable:$true] %s200_s3 }
 0x1b2   :  { %s266_s4 = scalar_lea.vmem %s201_s3, 128  ;;  %s270_s9 = scalar_lea.vmem %s201_s3, 256 }
 0x1b3   :  { %p267_p0 = scmp.ne.s32.totalorder %s201_s3, %s266_s4  ;;  %p271_p1 = scmp.lt.s32.totalorder %s201_s3, %s201_s3 }
 0x1b4   :  { %p272_p2 = scmp.lt.s32.totalorder %s270_s9, %s266_s4 }
 0x1b6   :  { %p273_p3 = por %p272_p2, %p271_p1 }
 0x1b8   :  { %p274_p4 = pnand %p273_p3, %p267_p0 }
 0x1ba   :  { %277 = shalt.err (!%p274_p4)
}
 0x1bb   :  { %s291_s10 = smov 128   ;;  %s292_s11 = smov 8  }
 0x1bc   :  { %206 = dma.vmem_to_hbm [thread:$0]  %s201_s3, 128, %s358_s5, [#allocation3], %s291_s10, %s291_s10, %s292_s11  }
 0x1bd   :  { %286 = dma.done.wait [#allocation3], 256  }
 0x1be   :  { %287 = vsyncadd [#allocation3], 4294967040 }
 0x1bf   :  { %210 = vsyncpa [#allocation3], 1 }

</bundles_post_ra>
